<compile_context>
chip_gen: v5e
topology: v5e:2x2
jax: 0.10.0
libtpu: 0.0.40
codegen_flags: <defaults>
</compile_context>

<pallas_src>
import functools
import math

import numpy as np
import jax
import jax.numpy as jnp
from jax.experimental import pallas as pl
from jax.experimental.pallas import tpu as pltpu


def _round_up(x: int, m: int) -> int:
    return ((x + m - 1) // m) * m


def fixed_embedding_table(c_in: int, d_model: int) -> np.ndarray:
    """Deterministic sinusoidal table, identical to FixedEmbedding.__init__ (f32)."""
    assert d_model % 2 == 0, "FixedEmbedding assumes even d_model (same as PyTorch code)"
    position = np.arange(c_in, dtype=np.float32)[:, None]                       # (c_in, 1)
    div_term = np.exp(np.arange(0, d_model, 2, dtype=np.float32)
                      * np.float32(-(math.log(10000.0) / d_model)))             # (d_model/2,)
    w = np.zeros((c_in, d_model), dtype=np.float32)
    w[:, 0::2] = np.sin(position * div_term)
    w[:, 1::2] = np.cos(position * div_term)
    return w


@functools.lru_cache(maxsize=None)
def _concat_table(d_model: int, freq: str):
    """Concatenated, K=128-row-padded, lane-padded f32 table + (col, row_offset) feats."""
    cols_sizes = [(3, 24), (2, 7), (1, 32), (0, 13)]                            # hour/wd/day/month
    if freq == "t":
        cols_sizes = [(4, 4)] + cols_sizes                                      # + minute
    d_pad = _round_up(d_model, 128)
    total_rows = sum(c for _, c in cols_sizes)                                  # 76 or 80
    K = _round_up(max(total_rows, 128), 128)                                    # -> 128
    big = np.zeros((K, d_pad), dtype=np.float32)
    feats = []
    row = 0
    for col, c_in in cols_sizes:
        big[row:row + c_in, :d_model] = fixed_embedding_table(c_in, d_model)
        feats.append((col, row))
        row += c_in
    return jnp.asarray(big), tuple(feats), K, d_pad


def _temporal_embed_kernel(x_ref, tab_ref, out_ref, *, feats):
    """x_ref:   (tile_n, F)   int32 raw calendar indices.
       tab_ref: (K=128, d_pad) f32 concatenated table (resident).
       out_ref: (tile_n, d_pad) output tile (f32 or bf16)."""
    tile_n = x_ref.shape[0]
    K = tab_ref.shape[0]
    lanes = jax.lax.broadcasted_iota(jnp.int32, (tile_n, K), 1)                 # (tile_n, K)

    # Multi-hot selector: OR of per-feature equality masks (disjoint lane ranges for
    # in-range indices), offsets folded into constant compare values -> zero extra
    # runtime cost.  Single cast to f32 for the MXU.
    mask = None
    for col, off in feats:                                                      # static 4-5 iters
        hit = x_ref[:, col:col + 1] == (lanes - off)                            # (tile_n, K) bool
        mask = hit if mask is None else jnp.logical_or(mask, hit)
    one_hot = mask.astype(jnp.float32)

    # Single K=128 matmul; f32 x f32 at HIGHEST precision -> exact lookups. MXU has
    # huge slack (kernel is writeback-bound), so this costs no wall-clock.
    acc = jnp.dot(one_hot, tab_ref[...],
                  preferred_element_type=jnp.float32,
                  precision=jax.lax.Precision.HIGHEST)
    out_ref[...] = acc.astype(out_ref.dtype)


def _pick_tile_n(N: int, d_pad: int, n_cols: int) -> int:
    """Biggest tile that fits a conservative VMEM budget (v5e 16MiB scoped default),
    capped so small inputs still get >= 2 tiles (v7x megacore)."""
    VMEM_BUDGET = 12 * 1024 * 1024
    # per-row bytes: f32 output double-buffer + f32 one-hot temp + int32 idx double-buffer
    per_row = d_pad * 4 * 2 + 128 * 4 + n_cols * 4 * 2
    tile_n = min(2048, max(256, VMEM_BUDGET // per_row))
    tile_n = (tile_n // 8) * 8
    n_rows8 = _round_up(N, 8)
    if n_rows8 >= 16:                                   # aim for >= 2 tiles when possible
        tile_n = min(tile_n, _round_up((n_rows8 + 1) // 2, 8))
    return max(8, min(tile_n, n_rows8))


def temporal_embedding(x, d_model: int, freq: str = "h", out_dtype=jnp.float32):
    """Pallas implementation of TemporalEmbedding(d_model, 'fixed', freq)(x)."""
    assert d_model % 2 == 0
    B, L, F = x.shape
    N = B * L

    big, feats, K, d_pad = _concat_table(d_model, freq)
    assert max(c for c, _ in feats) < F, "input has fewer feature columns than freq needs"

    x_flat = x.astype(jnp.int32).reshape(N, F)

    tile_n = _pick_tile_n(N, d_pad, F)
    N_pad = pl.cdiv(N, tile_n) * tile_n
    if N_pad != N:
        # Pad rows are all-zero indices -> valid row-0 lookups; sliced off below,
        # never observed by the caller.
        x_flat = jnp.pad(x_flat, ((0, N_pad - N), (0, 0)))

    kernel = functools.partial(_temporal_embed_kernel, feats=feats)

    out_flat = pl.pallas_call(
        kernel,
        out_shape=jax.ShapeDtypeStruct((N_pad, d_pad), out_dtype),
        grid=(N_pad // tile_n,),
        in_specs=[
            pl.BlockSpec((tile_n, F), lambda i: (i, 0)),                        # index tile
            pl.BlockSpec((K, d_pad), lambda i: (0, 0)),                         # resident table
        ],
        out_specs=pl.BlockSpec((tile_n, d_pad), lambda i: (i, 0)),
        compiler_params=pltpu.CompilerParams(
            dimension_semantics=("parallel",),      # independent tiles -> megacore sharding
        ),
    )(x_flat, big)

    if N_pad != N or d_pad != d_model:
        out_flat = out_flat[:N, :d_model]
    return out_flat.reshape(B, L, d_model)


def temporal_embedding_ref(x, d_model: int, freq: str = "h"):
    """Plain-JAX f32 reference of the PyTorch forward pass."""
    x = x.astype(jnp.int32)
    out = jnp.zeros(x.shape[:2] + (d_model,), dtype=jnp.float32)
    cols_sizes = [(3, 24), (2, 7), (1, 32), (0, 13)]
    if freq == "t":
        cols_sizes = [(4, 4)] + cols_sizes
    for col, c_in in cols_sizes:
        tab = jnp.asarray(fixed_embedding_table(c_in, d_model))
        out = out + jnp.take(tab, x[:, :, col], axis=0)
    return out


if __name__ == "__main__":
    B, L, F, d_model = 2, 8, 5, 32
    key = jax.random.PRNGKey(0)
    k_month, k_day, k_wd, k_hour, k_min = jax.random.split(key, 5)
    # feature order along the last axis: [month, day, weekday, hour, minute]
    x = jnp.stack(
        [
            jax.random.randint(k_month, (B, L), 0, 13),
            jax.random.randint(k_day, (B, L), 0, 32),
            jax.random.randint(k_wd, (B, L), 0, 7),
            jax.random.randint(k_hour, (B, L), 0, 24),
            jax.random.randint(k_min, (B, L), 0, 4),
        ],
        axis=-1,
    ).astype(jnp.int32)

    for freq in ("h", "t"):
        ref = temporal_embedding_ref(x, d_model, freq=freq)

        # f32 output path: exact-parity with the PyTorch module.
        out = jax.block_until_ready(temporal_embedding(x, d_model, freq=freq))
        assert out.shape == (B, L, d_model)
        assert jnp.allclose(out, ref, atol=1e-4), f"f32 mismatch vs exact ref ({freq})"

        # bf16 output path: halves the (dominant) output HBM traffic.
        out_bf16 = jax.block_until_ready(
            temporal_embedding(x, d_model, freq=freq, out_dtype=jnp.bfloat16))
        assert out_bf16.dtype == jnp.bfloat16
        assert jnp.allclose(out_bf16.astype(jnp.float32), ref, atol=4e-2), \
            f"bf16 mismatch vs exact ref ({freq})"

    print("KERNEL_OK")
</pallas_src>

<mosaic_0001>
module attributes {stable_mosaic.version = 11 : i64} {
  func.func @_temporal_embed_kernel(%arg0: i32, %arg1: memref<8x5xi32, #tpu.memory_space<vmem>>, %arg2: memref<128x128xf32, #tpu.memory_space<vmem>>, %arg3: memref<8x128xf32, #tpu.memory_space<vmem>>) attributes {dimension_semantics = [#tpu.dimension_semantics<parallel>], iteration_bounds = array<i64: 2>, scalar_prefetch = 0 : i64, scratch_operands = 0 : i64, tpu.core_type = #tpu.core_type<tc>, window_params = [{transform_indices = @transform_0, window_bounds = array<i64: 8, 5>}, {pipeline_mode = #tpu.pipeline_mode<synchronous>, transform_indices = @transform_1, window_bounds = array<i64: 128, 128>}, {transform_indices = @transform_2, window_bounds = array<i64: 8, 128>}]} {
    %0 = tpu.iota {dimensions = array<i32: 1>} : vector<8x128xi32>
    %c0 = arith.constant 0 : index
    %c3 = arith.constant 3 : index
    %1 = vector.load %arg1[%c0, %c3] : memref<8x5xi32, #tpu.memory_space<vmem>>, vector<8x1xi32>
    %c0_i32 = arith.constant 0 : i32
    %2 = vector.broadcast %c0_i32 : i32 to vector<8x128xi32>
    %3 = arith.subi %0, %2 : vector<8x128xi32>
    %4 = vector.broadcast %1 : vector<8x1xi32> to vector<8x128xi32>
    %5 = arith.cmpi eq, %4, %3 : vector<8x128xi32>
    %c0_0 = arith.constant 0 : index
    %c2 = arith.constant 2 : index
    %6 = vector.load %arg1[%c0_0, %c2] : memref<8x5xi32, #tpu.memory_space<vmem>>, vector<8x1xi32>
    %c24_i32 = arith.constant 24 : i32
    %7 = vector.broadcast %c24_i32 : i32 to vector<8x128xi32>
    %8 = arith.subi %0, %7 : vector<8x128xi32>
    %9 = vector.broadcast %6 : vector<8x1xi32> to vector<8x128xi32>
    %10 = arith.cmpi eq, %9, %8 : vector<8x128xi32>
    %11 = arith.ori %5, %10 : vector<8x128xi1>
    %c0_1 = arith.constant 0 : index
    %c1 = arith.constant 1 : index
    %12 = vector.load %arg1[%c0_1, %c1] : memref<8x5xi32, #tpu.memory_space<vmem>>, vector<8x1xi32>
    %c31_i32 = arith.constant 31 : i32
    %13 = vector.broadcast %c31_i32 : i32 to vector<8x128xi32>
    %14 = arith.subi %0, %13 : vector<8x128xi32>
    %15 = vector.broadcast %12 : vector<8x1xi32> to vector<8x128xi32>
    %16 = arith.cmpi eq, %15, %14 : vector<8x128xi32>
    %17 = arith.ori %11, %16 : vector<8x128xi1>
    %c0_2 = arith.constant 0 : index
    %c0_3 = arith.constant 0 : index
    %18 = vector.load %arg1[%c0_2, %c0_3] : memref<8x5xi32, #tpu.memory_space<vmem>>, vector<8x1xi32>
    %c63_i32 = arith.constant 63 : i32
    %19 = vector.broadcast %c63_i32 : i32 to vector<8x128xi32>
    %20 = arith.subi %0, %19 : vector<8x128xi32>
    %21 = vector.broadcast %18 : vector<8x1xi32> to vector<8x128xi32>
    %22 = arith.cmpi eq, %21, %20 : vector<8x128xi32>
    %23 = arith.ori %17, %22 : vector<8x128xi1>
    %24 = arith.extui %23 : vector<8x128xi1> to vector<8x128xi32>
    %25 = arith.sitofp %24 : vector<8x128xi32> to vector<8x128xf32>
    %c0_4 = arith.constant 0 : index
    %c0_5 = arith.constant 0 : index
    %26 = vector.load %arg2[%c0_4, %c0_5] : memref<128x128xf32, #tpu.memory_space<vmem>>, vector<128x128xf32>
    %cst = arith.constant dense<0.000000e+00> : vector<8x128xf32>
    %27 = tpu.matmul %25, %26, %cst {dimension_numbers = #tpu.dot_dimension_numbers<[1], [0], [0], [1], [0, 0, 1, 1], [], []>, precision = #tpu.contract_precision<fp32>} : vector<8x128xf32>, vector<128x128xf32>, vector<8x128xf32> -> vector<8x128xf32>
    %c0_6 = arith.constant 0 : index
    %c0_7 = arith.constant 0 : index
    %28 = vector.load %arg3[%c0_6, %c0_7] : memref<8x128xf32, #tpu.memory_space<vmem>>, vector<8x128xf32>
    tpu.vector_store %arg3[%c0_6, %c0_7], %27 {strides = array<i32>} : memref<8x128xf32, #tpu.memory_space<vmem>>, vector<8x128xf32>,
    return
  }
  func.func @transform_0(%arg0: i32) -> (i32, i32) {
    %c0_i32 = arith.constant 0 : i32
    %c0_i32_0 = arith.constant 0 : i32
    return %arg0, %c0_i32 : i32, i32
  }
  func.func @transform_1(%arg0: i32) -> (i32, i32) {
    %c0_i32 = arith.constant 0 : i32
    %c0_i32_0 = arith.constant 0 : i32
    %c0_i32_1 = arith.constant 0 : i32
    return %c0_i32, %c0_i32_0 : i32, i32
  }
  func.func @transform_2(%arg0: i32) -> (i32, i32) {
    %c0_i32 = arith.constant 0 : i32
    %c0_i32_0 = arith.constant 0 : i32
    return %arg0, %c0_i32 : i32, i32
  }
}

</mosaic_0001>

<bundles_post_ra>
// kernel: tpu_custom_call.1
= control target key start
LH: loop header
LB: loop body
LE: loop exit
PB: predicated region body
PF: predicated region fallthrough
CT: control target
= control target key end

     0   :  { %7 = vsyncpa [#allocation3], 0  ;;  %s1161_s0 = inlined_call_operand.vmem [shape: s32[16,5], index: 0, kind: input, shape index: {}]   ;;  %s1162_s1 = inlined_call_operand.hbm [shape: f32[128,128], index: 1, kind: input, shape index: {}]   ;;  %s1163_s2 = inlined_call_operand.hbm [shape: f32[16,128], index: 2, kind: output, shape index: {}]  }
   0x1   :  { %8 = vsyncpa [#allocation4], 0 }
   0x2   :  { %10 = vsyncpa [#allocation4 + $0x1], 0  ;;  %s832_s9 = smov 0   ;;  %s834_s10 = smov 0  }
   0x3   :  { %s836_s11 = smov 0   ;;  %s838_s12 = smov 0  }
   0x4 LB: > { %s853_s13 = sadd.s32 4294967295, %s806_s12   ;;  %s628_s14 = sadd.s32 4294967294, %s806_s12   ;;  %s806_s12 = sphi %s838_s12, %s1169_s12   ;;  %s802_s11 = sphi %s836_s11, %s1168_s11   ;;  %s798_s10 = sphi %s834_s10, %s1167_s10   ;;  %s794_s9 = sphi %s832_s9, %s1166_s9  }
   0x5   : > { %s857_s15 = sadd.s32 1, %s806_s12   ;;  %s70_s16 = sadd.s32 1, %s802_s11 }
   0x6   : > { %s67_s17 = ssub.s32 %s806_s12, %s857_s15  ;;  %p80_p0 = scmp.ne.s32.totalorder %s802_s11, %s798_s10 }
   0x7   : > { %p68_p1 = scmp.eq.s32.totalorder %s67_s17, 0  ;;  %p81_p2 = scmp.eq.s32.totalorder %s853_s13, 1 }
   0x8   : > { %p86_p3 = scmp.ne.s32.totalorder %s798_s10, %s794_s9  ;;  %p87_p4 = scmp.eq.s32.totalorder %s628_s14, 1 }
   0x9   : > { %s868_s18 = scalar_select %p68_p1, %s802_s11, %s70_s16  }
   0xa   : > { %p870_p5 = por %p81_p2, %p80_p0  ;;  %p874_p6 = por %p87_p4, %p86_p3 }
   0xb   : > { %p629_p7 = scmp.ge.s32.totalorder %s806_s12, 1  ;;  %p94_p8 = scmp.lt.s32.totalorder %s806_s12, 3 }
   0xc   : > { %p661_p9 = scmp.eq.s32.totalorder %s853_s13, 0  ;;  %s105_s23 = sshll.u32 %s1162_s1, 4  ;;  %s106_s23 = int_to_ptr.hbm [resolvable:$true] %s105_s23 }
   0xd   : > { %p95_p10 = pnand %p629_p7, %p94_p8  ;;  %s808_s24 = smov [#allocation2]  }
   0xe   : > { %s107_s25 = sshll.u32 %s808_s24, 4  ;;  %s809_s26 = smov 128   ;;  %s108_s25 = int_to_ptr.vmem [resolvable:$true] %s107_s25 }
   0xf   : > { %p653_p11 = pneg %p95_p10  ;;  %s810_s27 = smov 8  }
  0x10   : > { %130 = sbr.rel (%p95_p10) target bundleno = 307 (0x133), region = 28 }
  0x11   : > { %p654_p12 = pnand %p661_p9, %p653_p11 }
  0x13   : > { %656 = dma.hbm_to_vmem [thread:$0]  (!%p654_p12), %s106_s23, 2048, %s108_s25, [#allocation3], %s809_s26, %s809_s26, %s810_s27  }
  0x15   : > { %785 = dma.done.wait (%p661_p9), [#allocation3], 2048  }
  0x16   : > { %787 = vsyncadd (%p661_p9), [#allocation3], 4294965248  ;;  %p152_p13 = scmp.lt.s32.totalorder %s853_s13, 1  ;;  %v811_v0 = vmov 3   ;;  %v812_v1 = vmov 1   ;;  %v198_v3 = vld [vmem:[#allocation2 + $0x78] sm:$0xff] }
  0x17   : > { %705 = vset.pattern.permute.xlu0 %v811_v0  ;;  %707 = vset.pattern.permute.xlu1 %v812_v1  ;;  %v197_v4 = vld [vmem:[#allocation2 + $0x70] sm:$0xff]  ;;  %v895_v5 = vand.u32 4294901760, %v198_v3  ;;  %v196_v7 = vld [vmem:[#allocation2 + $0x68] sm:$0xff]  ;;  %v195_v8 = vld [vmem:[#allocation2 + $0x60] sm:$0xff]  ;;  %v813_v38 = vmov 2   ;;  %v814_v39 = vmov 0  }
  0x18   : > { %s153_s28 = scalar_select %p152_p13, %s853_s13, 1  ;;  %v897_v6 = vand.u32 4294901760, %v197_v4  ;;  %v194_v9 = vld [vmem:[#allocation2 + $0x58] sm:$0xff]  ;;  %v899_v10 = vand.u32 4294901760, %v196_v7  ;;  %v901_v11 = vand.u32 4294901760, %v195_v8  ;;  %v193_v13 = vld [vmem:[#allocation2 + $0x50] sm:$0xff] }
  0x19   : > { %v903_v12 = vand.u32 4294901760, %v194_v9  ;;  %v192_v14 = vld [vmem:[#allocation2 + $0x48] sm:$0xff]  ;;  %v191_v15 = vld [vmem:[#allocation2 + $0x40] sm:$0xff]  ;;  %v906_v16 = vsub.f32 %v198_v3, %v895_v5  ;;  %200 = vmatpush.msra.mxu0 %v895_v5  ;;  %v912_v18 = vand.u32 4294901760, %v193_v13  ;;  %396 = vmatpush.msra.mxu3 %v895_v5  ;;  %v190_v36 = vld [vmem:[#allocation2 + $0x38] sm:$0xff]  ;;  %s149_s5 = sand.u32 1, %s798_s10  }
  0x1a   : > { %s635_s29 = sshll.u32 %s153_s28, 3  ;;  %v909_v17 = vsub.f32 %v197_v4, %v897_v6  ;;  %v914_v19 = vand.u32 4294901760, %v192_v14  ;;  %v918_v20 = vsub.f32 %v196_v7, %v899_v10  ;;  %v921_v21 = vsub.f32 %v195_v8, %v901_v11  ;;  %v189_v37 = vld [vmem:[#allocation2 + $0x30] sm:$0xff]  ;;  %v188_v43 = vld [vmem:[#allocation2 + $0x28] sm:$0xff]  ;;  %v187_v45 = vld [vmem:[#allocation2 + $0x20] sm:$0xff]  ;;  %s634_s6 = sshll.u32 %s149_s5, 3 }
  0x1b   : > { %s155_s4 = scalar_lea.vmem %s1161_s0, %s635_s29  ;;  %v924_v22 = vsub.f32 %v194_v9, %v903_v12  ;;  %v926_v23 = vand.u32 4294901760, %v191_v15  ;;  %v242_v24 = vand.u32 4294901760, %v906_v16  ;;  %v931_v26 = vsub.f32 %v193_v13, %v912_v18  ;;  %202 = vmatpush.msra.mxu0 %v897_v6  ;;  %343 = vmatpush.msra.mxu2 %v906_v16  ;;  %v186_v53 = vld [vmem:[#allocation2 + $0x18] sm:$0xff]  ;;  %v185_v59 = vld [vmem:[#allocation2 + $0x10] sm:$0xff]  ;;  %v184_v1 = vld [vmem:[#allocation2 + $0x8] sm:$0xff]  ;;  %s644_s7 = sshll.u32 %s853_s13, 3 }
  0x1c   : > { %v158_v2 = vld [vmem:[%s155_s4] sm:$0xff]  ;;  %v248_v25 = vand.u32 4294901760, %v909_v17  ;;  %v254_v27 = vand.u32 4294901760, %v918_v20  ;;  %v260_v28 = vand.u32 4294901760, %v921_v21  ;;  %v938_v29 = vsub.f32 %v192_v14, %v914_v19  ;;  %398 = vmatpush.msra.mxu3 %v897_v6  ;;  %s552_s16 = scalar_lea.hbm %s1163_s2, %s644_s7  ;;  %s151_s17 = scalar_lea.vmem [#allocation5], %s634_s6 }
  0x1d   : > { %160 = vperm.xlu0 %705, %v158_v2   ;;  %171 = vperm.xlu1 %707, %v158_v2   ;;  %v243_v30 = vsub.f32 %v906_v16, %v242_v24  ;;  %v266_v32 = vand.u32 4294901760, %v924_v22  ;;  %v272_v34 = vand.u32 4294901760, %v931_v26  ;;  %v955_v35 = vsub.f32 %v191_v15, %v926_v23  ;;  %v183_v9 = vld [vmem:[#allocation2] sm:$0xff]  ;;  %s554_s21 = sshll.u32 %s151_s17, 4  ;;  %s556_s22 = sshll.u32 %s552_s16, 4  ;;  %s555_s21 = int_to_ptr.vmem [resolvable:$true] %s554_s21  ;;  %s557_s22 = int_to_ptr.hbm [resolvable:$true] %s556_s22 }
  0x1e   : > { %v249_v31 = vsub.f32 %v909_v17, %v248_v25  ;;  %204 = vmatpush.msra.mxu0 %v899_v10  ;;  %346 = vmatpush.msra.mxu2 %v909_v17  ;;  %v255_v33 = vsub.f32 %v918_v20, %v254_v27  ;;  %v261_v42 = vsub.f32 %v921_v21, %v260_v28  ;;  %v278_v44 = vand.u32 4294901760, %v938_v29  ;;  %s542_s23 = scalar_lea.sflag [#allocation4], %s149_s5  ;;  %s754_s13 = sshra.s32 %s557_s22, 4  ;;  %s755_s13 = int_to_ptr.hbm [resolvable:$true] %s754_s13 }
  0x1f   : > { %400 = vmatpush.msra.mxu3 %v899_v10  ;;  %v244_v40 = vand.u32 4294901760, %v243_v30  ;;  %v267_v47 = vsub.f32 %v924_v22, %v266_v32  ;;  %v967_v48 = vand.u32 4294901760, %v190_v36  ;;  %v969_v49 = vand.u32 4294901760, %v189_v37  ;;  %s756_s24 = scalar_lea.hbm %s755_s13, 8  ;;  %s760_s27 = scalar_lea.hbm %s1163_s2, 16 }
  0x20   : > { %v250_v41 = vand.u32 4294901760, %v249_v31  ;;  %v256_v46 = vand.u32 4294901760, %v255_v33  ;;  %206 = vmatpush.msra.mxu0 %v901_v11  ;;  %v273_v50 = vsub.f32 %v931_v26, %v272_v34  ;;  %v284_v51 = vand.u32 4294901760, %v955_v35  ;;  %349 = vmatpush.msra.mxu2 %v918_v20  ;;  %p757_p0 = scmp.ne.s32.totalorder %s755_s13, %s756_s24  ;;  %p761_p3 = scmp.lt.s32.totalorder %s755_s13, %s1163_s2 }
  0x21   : > { %245 = vmatpush.msra.mxu1 %v244_v40  ;;  %v975_v52 = vand.u32 4294901760, %v188_v43  ;;  %402 = vmatpush.msra.mxu3 %v901_v11  ;;  %v262_v54 = vand.u32 4294901760, %v261_v42  ;;  %v980_v55 = vsub.f32 %v190_v36, %v967_v48  ;;  %v984_v56 = vsub.f32 %v189_v37, %v969_v49  ;;  %p762_p4 = scmp.lt.s32.totalorder %s760_s27, %s756_s24 }
  0x22   : > { %208 = vmatpush.msra.mxu0 %v903_v12  ;;  %v986_v57 = vand.u32 4294901760, %v187_v45  ;;  %v279_v58 = vsub.f32 %v938_v29, %v278_v44  ;;  %352 = vmatpush.msra.mxu2 %v921_v21  ;;  %v268_v60 = vand.u32 4294901760, %v267_v47  ;;  %v998_v63 = vand.u32 4294901760, %v186_v53  ;;  %p758_p1 = pnand %p757_p0, %p870_p5 }
  0x23   : > { %251 = vmatpush.msra.mxu1 %v250_v41  ;;  %404 = vmatpush.msra.mxu3 %v903_v12  ;;  %v290_v61 = vand.u32 4294901760, %v980_v55  ;;  %v996_v62 = vsub.f32 %v188_v43, %v975_v52  ;;  %v285_v0 = vsub.f32 %v955_v35, %v284_v51  ;;  %v296_v3 = vand.u32 4294901760, %v984_v56  ;;  %p763_p7 = por %p762_p4, %p761_p3 }
  0x24   : > { %210 = vmatpush.msra.mxu0 %v912_v18  ;;  %355 = vmatpush.msra.mxu2 %v924_v22  ;;  %v1008_v4 = vsub.f32 %v187_v45, %v986_v57  ;;  %v1010_v7 = vand.u32 4294901760, %v185_v59  ;;  %v280_v8 = vand.u32 4294901760, %v279_v58  ;;  %v1020_v15 = vsub.f32 %v186_v53, %v998_v63  ;;  %p759_p2 = pneg %p758_p1 }
  0x25   : > { %706 = vset.pattern.permute.xlu0 %v813_v38  ;;  %708 = vset.pattern.permute.xlu1 %v814_v39  ;;  %v291_v13 = vsub.f32 %v980_v55, %v290_v61  ;;  %v302_v14 = vand.u32 4294901760, %v996_v62  ;;  %v1022_v30 = vand.u32 4294901760, %v184_v1  ;;  %v286_v31 = vand.u32 4294901760, %v285_v0 }
  0x26   : > { %165 = vperm.xlu0 %706, %v158_v2   ;;  %177 = vperm.xlu1 %708, %v158_v2   ;;  %v274_v2 = vand.u32 4294901760, %v273_v50  ;;  %v297_v33 = vsub.f32 %v984_v56, %v296_v3  ;;  %v308_v36 = vand.u32 4294901760, %v1008_v4  ;;  %v1032_v37 = vsub.f32 %v185_v59, %v1010_v7  ;;  %p764_p8 = pnand %p763_p7, %p759_p2 }
  0x27   : > { %257 = vmatpush.msra.mxu1 %v256_v46  ;;  %406 = vmatpush.msra.mxu3 %v912_v18  ;;  %v1034_v38 = vand.u32 4294901760, %v183_v9  ;;  %v292_v40 = vand.u32 4294901760, %v291_v13  ;;  %v303_v41 = vsub.f32 %v996_v62, %v302_v14  ;;  %v314_v42 = vand.u32 4294901760, %v1020_v15 }
  0x28   : > { %212 = vmatpush.msra.mxu0 %v914_v19  ;;  %358 = vmatpush.msra.mxu2 %v931_v26  ;;  %v1044_v43 = vsub.f32 %v184_v1, %v1022_v30  ;;  %v298_v45 = vand.u32 4294901760, %v297_v33  ;;  %v309_v46 = vsub.f32 %v1008_v4, %v308_v36  ;;  %v320_v47 = vand.u32 4294901760, %v1032_v37 }
  0x29   : > { %263 = vmatpush.msra.mxu1 %v262_v54  ;;  %408 = vmatpush.msra.mxu3 %v914_v19  ;;  %v1054_v50 = vsub.f32 %v183_v9, %v1034_v38  ;;  %v304_v53 = vand.u32 4294901760, %v303_v41  ;;  %v315_v54 = vsub.f32 %v1020_v15, %v314_v42  ;;  %v815_v20 = vmov 1.0  }
  0x2a   : > { %214 = vmatpush.msra.mxu0 %v926_v23  ;;  %361 = vmatpush.msra.mxu2 %v938_v29  ;;  %v326_v58 = vand.u32 4294901760, %v1044_v43  ;;  %v310_v59 = vand.u32 4294901760, %v309_v46  ;;  %v816_v21 = vmov 0.0  }
  0x2b   : > { %269 = vmatpush.msra.mxu1 %v268_v60  ;;  %410 = vmatpush.msra.mxu3 %v926_v23  ;;  %v321_v60 = vsub.f32 %v1032_v37, %v320_v47  ;;  %v332_v0 = vand.u32 4294901760, %v1054_v50  ;;  %v316_v1 = vand.u32 4294901760, %v315_v54 }
  0x2c   : > { %216 = vmatpush.msra.mxu0 %v967_v48  ;;  %364 = vmatpush.msra.mxu2 %v955_v35 }
  0x2d   : > { %275 = vmatpush.msra.mxu1 %v274_v2  ;;  %412 = vmatpush.msra.mxu3 %v967_v48  ;;  %v327_v2 = vsub.f32 %v1044_v43, %v326_v58  ;;  %v333_v9 = vsub.f32 %v1054_v50, %v332_v0 }
  0x2e   : > { %218 = vmatpush.msra.mxu0 %v969_v49  ;;  %367 = vmatpush.msra.mxu2 %v980_v55 }
  0x2f   : > { %281 = vmatpush.msra.mxu1 %v280_v8  ;;  %414 = vmatpush.msra.mxu3 %v969_v49  ;;  %v322_v8 = vand.u32 4294901760, %v321_v60  ;;  %v328_v13 = vand.u32 4294901760, %v327_v2 }
  0x30   : > { %220 = vmatpush.msra.mxu0 %v975_v52  ;;  %370 = vmatpush.msra.mxu2 %v984_v56 }
  0x31   : > { %287 = vmatpush.msra.mxu1 %v286_v31  ;;  %416 = vmatpush.msra.mxu3 %v975_v52  ;;  %v334_v31 = vand.u32 4294901760, %v333_v9 }
  0x32   : > { %222 = vmatpush.msra.mxu0 %v986_v57  ;;  %373 = vmatpush.msra.mxu2 %v996_v62 }
  0x33   : > { %293 = vmatpush.msra.mxu1 %v292_v40  ;;  %418 = vmatpush.msra.mxu3 %v986_v57 }
  0x34   : > { %224 = vmatpush.msra.mxu0 %v998_v63  ;;  %376 = vmatpush.msra.mxu2 %v1008_v4 }
  0x35   : > { %299 = vmatpush.msra.mxu1 %v298_v45  ;;  %420 = vmatpush.msra.mxu3 %v998_v63 }
  0x36   : > { %226 = vmatpush.msra.mxu0 %v1010_v7  ;;  %379 = vmatpush.msra.mxu2 %v1020_v15 }
  0x37   : > { %305 = vmatpush.msra.mxu1 %v304_v53  ;;  %422 = vmatpush.msra.mxu3 %v1010_v7 }
  0x38   : > { %228 = vmatpush.msra.mxu0 %v1022_v30  ;;  %382 = vmatpush.msra.mxu2 %v1032_v37 }
  0x39   : > { %311 = vmatpush.msra.mxu1 %v310_v59  ;;  %424 = vmatpush.msra.mxu3 %v1022_v30 }
  0x3a   : > { %230 = vmatpush.msra.mxu0 %v1034_v38  ;;  %385 = vmatpush.msra.mxu2 %v1044_v43 }
  0x3b   : > { %317 = vmatpush.msra.mxu1 %v316_v1  ;;  %426 = vmatpush.msra.mxu3 %v1034_v38 }
  0x3c   : > { %437 = vmatpush.msrb.mxu0 %v242_v24  ;;  %388 = vmatpush.msra.mxu2 %v1054_v50 }
  0x3d   : > { %323 = vmatpush.msra.mxu1 %v322_v8  ;;  %709 = vset.pattern.permute.xlu0 %v814_v39 }
  0x3e   : > { %441 = vmatpush.msrb.mxu0 %v248_v25 }
  0x3f   : > { %329 = vmatpush.msra.mxu1 %v328_v13 }
  0x40   : > { %445 = vmatpush.msrb.mxu0 %v254_v27 }
  0x41   : > { %335 = vmatpush.msra.mxu1 %v334_v31 }
  0x42   : > { %449 = vmatpush.msrb.mxu0 %v260_v28 }
  0x43   : > { %504 = vmatpush.msrb.mxu1 %v895_v5  ;;  %v156_v5 = vlaneseq }
  0x44   : > { %453 = vmatpush.msrb.mxu0 %v266_v32 }
  0x45   : > { %506 = vmatpush.msrb.mxu1 %v897_v6 }
  0x46   : > { %457 = vmatpush.msrb.mxu0 %v272_v34 }
  0x47   : > { %508 = vmatpush.msrb.mxu1 %v899_v10 }
  0x48   : > { %461 = vmatpush.msrb.mxu0 %v278_v44 }
  0x49   : > { %510 = vmatpush.msrb.mxu1 %v901_v11  ;;  %v157_v11 = vand.u32 127, %v156_v5 }
  0x4a   : > { %465 = vmatpush.msrb.mxu0 %v284_v51 }
  0x4b   : > { %512 = vmatpush.msrb.mxu1 %v903_v12  ;;  %v636_v12 = vadd.s32 4294967272, %v157_v11  ;;  %v638_v16 = vadd.s32 4294967233, %v157_v11  ;;  %v637_v17 = vadd.s32 4294967265, %v157_v11 }
  0x4c   : > { %469 = vmatpush.msrb.mxu0 %v290_v61 }
  0x4d   : > { %514 = vmatpush.msrb.mxu1 %v912_v18 }
  0x4e   : > { %473 = vmatpush.msrb.mxu0 %v296_v3 }
  0x4f   : > { %516 = vmatpush.msrb.mxu1 %v914_v19 }
  0x50   : > { %477 = vmatpush.msrb.mxu0 %v302_v14 }
  0x51   : > { %518 = vmatpush.msrb.mxu1 %v926_v23 }
  0x52   : > { %481 = vmatpush.msrb.mxu0 %v308_v36 }
  0x53   : > { %520 = vmatpush.msrb.mxu1 %v967_v48 }
  0x54   : > { %485 = vmatpush.msrb.mxu0 %v314_v42 }
  0x55   : > { %522 = vmatpush.msrb.mxu1 %v969_v49 }
  0x56   : > { %489 = vmatpush.msrb.mxu0 %v320_v47 }
  0x57   : > { %524 = vmatpush.msrb.mxu1 %v975_v52 }
  0x58   : > { %493 = vmatpush.msrb.mxu0 %v326_v58 }
  0x59   : > { %526 = vmatpush.msrb.mxu1 %v986_v57 }
  0x5a   : > { %497 = vmatpush.msrb.mxu0 %v332_v0 }
  0x5b   : > { %528 = vmatpush.msrb.mxu1 %v998_v63 }
  0x5d   : > { %530 = vmatpush.msrb.mxu1 %v1010_v7 }
  0x5f   : > { %532 = vmatpush.msrb.mxu1 %v1022_v30 }
  0x61   : > { %534 = vmatpush.msrb.mxu1 %v1034_v38 }
  0x8f   : > { %v161_v6 = vpop.permute.xlu0 %160  ;;  %v172_v10 = vpop.permute.xlu1 %171 }
  0x90   : > { %vm162_vm0 = vcmp.eq.s32.totalorder %v161_v6, %v157_v11  ;;  %vm173_vm3 = vcmp.eq.s32.totalorder %v172_v10, %v637_v17 }
  0x98   : > { %v166_v18 = vpop.permute.xlu0 %165  ;;  %v178_v19 = vpop.permute.xlu1 %177 }
  0x99   : > { %vm167_vm1 = vcmp.eq.s32.totalorder %v166_v18, %v636_v12  ;;  %vm179_vm2 = vcmp.eq.s32.totalorder %v178_v19, %v638_v16 }
  0x9a   : > { %vm168_vm4 = vmor %vm162_vm0, %vm167_vm1 }
  0x9b   : > { %vm174_vm5 = vmor %vm168_vm4, %vm173_vm3 }
  0x9c   : > { %vm180_vm6 = vmor %vm174_vm5, %vm179_vm2 }
  0x9d   : > { %640 = vmatmul.msk.f32.vlgmr.msra.gmra.mxu1 %vm180_vm6, %v815_v20  ;;  %v639_v22 = vsel %vm180_vm6, 1.0, %v816_v21 }
  0x9e   : > { %v232_v23 = vsub.f32 %v639_v22, %v639_v22 }
  0xa0   : > { %391 = vmatmul.f32.vlgmr.msra.gmra.mxu2 %v232_v23  ;;  %v233_v24 = vand.u32 4294901760, %v232_v23 }
  0xa2   : > { %430 = vmatmul.f32.vlgmr.msra.gmra.mxu3 %v233_v24  ;;  %v234_v25 = vsub.f32 %v232_v23, %v233_v24 }
  0xa4   : > { %v235_v26 = vand.u32 4294901760, %v234_v25 }
  0xa5   : > { %642 = vmatmul.msk.f32.vlgmr.msrb.gmra.mxu1 %vm180_vm6, %v815_v20 }
  0xa6   : > { %236 = vmatmul.f32.vlgmr.msra.gmra.mxu0 %v235_v26 }
  0xae   : > { %641 = vmatmul.msk.f32.vlgmr.msrb.gmra.mxu0 %vm180_vm6, %v815_v20 }
 0x11a   : > { %v338_v27 = vpop.f32.mrf.mxu1 }
 0x122   : > { %v537_v49 = vpop.f32.mrf.mxu1 }
 0x123   : > { %v237_v28 = vpop.f32.mrf.mxu0  ;;  %v392_v32 = vpop.f32.mrf.mxu2 }
 0x124   : > { %v339_v29 = vadd.f32 %v338_v27, %v237_v28 }
 0x125   : > { %v431_v35 = vpop.f32.mrf.mxu3 }
 0x126   : > { %v393_v34 = vadd.f32 %v392_v32, %v339_v29 }
 0x128   : > { %v432_v39 = vadd.f32 %v431_v35, %v393_v34 }
 0x12b   : > { %v500_v44 = vpop.f32.mrf.mxu0 }
 0x12c   : > { %v501_v48 = vadd.f32 %v500_v44, %v432_v39 }
 0x12e   : > { %v538_v51 = vadd.f32 %v537_v49, %v501_v48 }
 0x130   : > { %540 = vst [vmem:[%s151_s17] sm:$0xff] %v538_v51 }
 0x131   : > { %767 = shalt.err (!%p764_p8)
}
 0x132   : > { %651 = dma.vmem_to_hbm [thread:$0]  (%p870_p5), %s555_s21, 128, %s557_s22, %s542_s23  }
 0x133 PF: > { %p663_p9 = scmp.ge.s32.totalorder %s806_s12, 2  ;;  %s568_s30 = sand.u32 1, %s794_s9  }
 0x134   : > { %s569_s3 = scalar_lea.sflag [#allocation4], %s568_s30 }
 0x135   : > { %p658_p10 = pnand %p663_p9, %p874_p6 }
 0x137   : > { %p659_p11 = pneg %p658_p10 }
 0x139   : > { %789 = dma.done.wait (%p659_p11), %s569_s3, 128  }
 0x13a   : > { %791 = vsyncadd (%p659_p11), %s569_s3, 4294967168  ;;  %p13_p12 = scmp.ge.s32.totalorder %s857_s15, 4   ;;  %s1166_s9 = smov %s798_s10 }
 0x13b   : > { %s1167_s10 = smov %s802_s11  ;;  %s1168_s11 = smov %s868_s18 }
 0x13c   : > { %s1169_s12 = smov %s857_s15  ;;  %15 = sbr.rel (!%p13_p12) target bundleno = 4 (0x4), region = 68 }
 0x141   :  { %575 = vsyncpa [#allocation3], 1 }
 0x142   :  { %577 = vsyncpa [#allocation3 + $0x1], 1 }
 0x143   :  { %578 = vsyncpa [#allocation4], 1 }
 0x144   :  { %580 = vsyncpa [#allocation4 + $0x1], 1 }

</bundles_post_ra>
